<compile_context>
chip_gen: v5e
topology: v5e:2x2
jax: 0.10.0
libtpu: 0.0.40
codegen_flags: <defaults>
</compile_context>

<pallas_src>
import math

import jax
import jax.numpy as jnp
from jax.experimental import pallas as pl
from jax.experimental.pallas import tpu as pltpu

# ----------------------------- config (small, consistent with the module) ----
B = 8                 # batch
EMB = 128             # embedding_dim
NUM_CB = 8            # num_codebooks (heads)
KV_PAIRS = 64         # key_value_pairs
CB_DIM = EMB // NUM_CB          # codebook_dim = 16
NUM_MEM = KV_PAIRS // NUM_CB    # memories per codebook = 8
DIM_MEM = EMB // NUM_CB         # value_dimension = 'same' -> 16
HID = [64, 32]        # hidden_dense_layers
NCLS = 16             # num_classes
FH, FW = 4, 4         # spatial size of the encoder feature map
KTOT = NUM_CB * NUM_MEM         # 64 = total keys across heads


# ----------------------------- fused kernel ----------------------------------
def dkvb_fused_kernel(x_ref, wkeys_ref, cbsq_ref, wvals_ref, weff_ref, beff_ref,
                      o_ref):
    # x_ref:     (B, H*W, C=128)   encoder layer3 feature map (C on lanes)
    # wkeys_ref: (128, 64)         block-diagonal per-head codebook keys
    # cbsq_ref:  (1, 64)           ||codebook||^2 per (head, key)
    # wvals_ref: (64, 128)         block-diagonal per-head value memories
    # weff_ref:  (128, 16)         folded decoder weights
    # beff_ref:  (1, 16)           folded decoder bias
    # o_ref:     (B, 16)           softmax class probabilities

    # ---- encoder tail: AdaptiveAvgPool2d((1,1)) == mean over spatial (sublane reduce)
    emb = jnp.mean(x_ref[...].astype(jnp.float32), axis=1)            # (B, 128)

    # ---- discrete key-value bottleneck (block-diagonal formulation) ----
    # cross[b, h*K+k] = <emb_head_h[b], codebook[h,k]>  via one lane-dense matmul
    cross = jnp.dot(emb, wkeys_ref[...],
                    preferred_element_type=jnp.float32)               # (B, 64)
    # squared-euclidean distance with the argmin-invariant ||e||^2 term dropped
    dist = cbsq_ref[...] - 2.0 * cross                                # (B, 64)

    # per-head argmin over K (first occurrence on ties), min-reduces only
    d3 = dist.reshape(B, NUM_CB, NUM_MEM)                             # (B, H, K)
    d_min = jnp.min(d3, axis=-1, keepdims=True)                       # (B, H, 1)
    k_iota = jax.lax.broadcasted_iota(jnp.int32, d3.shape, 2)         # (B, H, K)
    idx = jnp.min(jnp.where(d3 == d_min, k_iota, jnp.int32(NUM_MEM)),
                  axis=-1, keepdims=True)                             # (B, H, 1)
    onehot = (k_iota == idx).astype(jnp.float32).reshape(B, KTOT)     # (B, 64)

    # value gather as one-hot @ block-diagonal values -> lane-dense mem (B, 128)
    # (column ordering == 'b h n d -> b n (h d)' of the torch module)
    mem = jnp.dot(onehot, wvals_ref[...],
                  preferred_element_type=jnp.float32)                 # (B, 128)

    # ---- decoder: Dropout(eval)=identity, 3 folded Linears, Softmax(dim=1) ----
    logits = jnp.dot(mem, weff_ref[...],
                     preferred_element_type=jnp.float32) + beff_ref[...]
    z = logits - jnp.max(logits, axis=-1, keepdims=True)
    ez = jnp.exp(z)
    o_ref[...] = (ez / jnp.sum(ez, axis=-1, keepdims=True)).astype(o_ref.dtype)


# ----------------------------- wrapper ----------------------------------------
def _full_spec(shape):
    n = len(shape)
    return pl.BlockSpec(shape, lambda i, _n=n: (0,) * _n)


def dkvb_forward(feat_bhwc, prep):
    """feat_bhwc: (B, H, W, C) NHWC layer3 feature map; prep: frozen packed params."""
    wkeys, cbsq, wvals, weff, beff = prep
    b, h, w, c = feat_bhwc.shape
    x = feat_bhwc.reshape(b, h * w, c)          # free reshape, C stays on lanes
    return pl.pallas_call(
        dkvb_fused_kernel,
        out_shape=jax.ShapeDtypeStruct((b, NCLS), jnp.float32),
        grid=(1,),
        in_specs=[_full_spec((b, h * w, c)),
                  _full_spec((EMB, KTOT)),
                  _full_spec((1, KTOT)),
                  _full_spec((KTOT, EMB)),
                  _full_spec((EMB, NCLS)),
                  _full_spec((1, NCLS))],
        out_specs=_full_spec((b, NCLS)),
        compiler_params=pltpu.CompilerParams(dimension_semantics=("arbitrary",)),
    )(x, wkeys, cbsq, wvals, weff, beff)


# ----------------------------- frozen-parameter prep (one-time) ---------------
def prepare_frozen_params(codebook, values, dec_params):
    """Pack frozen DKVB parameters once, outside the jit hot path."""
    w1, b1, w2, b2, w3, b3 = dec_params

    # block-diagonal key matrix:   Wkeys[h*Cd + d, h*K + k] = codebook[h, k, d]
    # block-diagonal value matrix: Wvals[h*K + k, h*Dv + d] = values[h, k, d]
    wkeys = jnp.zeros((EMB, KTOT), jnp.float32)
    wvals = jnp.zeros((KTOT, EMB), jnp.float32)
    for hh in range(NUM_CB):
        wkeys = wkeys.at[hh * CB_DIM:(hh + 1) * CB_DIM,
                         hh * NUM_MEM:(hh + 1) * NUM_MEM].set(codebook[hh].T)
        wvals = wvals.at[hh * NUM_MEM:(hh + 1) * NUM_MEM,
                         hh * DIM_MEM:(hh + 1) * DIM_MEM].set(values[hh])

    cbsq = jnp.sum(codebook * codebook, axis=-1).reshape(1, KTOT)   # (1, 64)

    # fold the activation-free decoder (Dropout == identity in eval)
    weff = w1 @ w2 @ w3                                             # (128, 16)
    beff = (b1 @ w2 + b2) @ w3 + b3                                 # (1, 16)
    return (wkeys, cbsq, wvals, weff, beff)


# ----------------------------- pure-JAX reference (per-head, unfolded) --------
def ref_forward(feat_bhwc, codebook, values, dec_params):
    w1, b1, w2, b2, w3, b3 = dec_params
    emb = jnp.mean(feat_bhwc, axis=(1, 2))                            # (B, EMB)
    e_h = emb.reshape(B, NUM_CB, CB_DIM).transpose(1, 0, 2)           # (H, B, Cd)
    dist = (jnp.sum(e_h * e_h, -1)[:, :, None]
            - 2.0 * jnp.einsum('hbd,hkd->hbk', e_h, codebook)
            + jnp.sum(codebook * codebook, -1)[:, None, :])           # (H, B, K)
    idx = jnp.argmin(dist, axis=-1)                                   # (H, B)
    mem = values[jnp.arange(NUM_CB)[:, None], idx]                    # (H, B, Dv)
    mem = mem.transpose(1, 0, 2).reshape(B, EMB)                      # (B, 128)
    h1 = mem @ w1 + b1
    h2 = h1 @ w2 + b2
    logits = h2 @ w3 + b3
    return jax.nn.softmax(logits, axis=1)


# ----------------------------- parameter init ---------------------------------
def init_linear(key, fan_in, fan_out):
    kw, kb = jax.random.split(key)
    bound = 1.0 / math.sqrt(fan_in)
    w = jax.random.uniform(kw, (fan_in, fan_out), jnp.float32, -bound, bound)
    b = jax.random.uniform(kb, (1, fan_out), jnp.float32, -bound, bound)
    return w, b


if __name__ == "__main__":
    root = jax.random.PRNGKey(0)
    k_feat, k_cb, k_val, k_l1, k_l2, k_l3 = jax.random.split(root, 6)

    # encoder layer3 feature map, NHWC (stand-in for the frozen dino_resnet50 trunk;
    # NHWC keeps C=128 on lanes and avoids a host-side transpose op)
    feat = jax.random.normal(k_feat, (B, FH, FW, EMB), jnp.float32)

    # bottleneck parameters: separate codebook (keys) per head + value memories
    codebook = jax.random.normal(k_cb, (NUM_CB, NUM_MEM, CB_DIM), jnp.float32)
    values = jax.random.normal(k_val, (NUM_CB, NUM_MEM, DIM_MEM), jnp.float32)

    # decoder parameters
    w1, b1 = init_linear(k_l1, EMB, HID[0])
    w2, b2 = init_linear(k_l2, HID[0], HID[1])
    w3, b3 = init_linear(k_l3, HID[1], NCLS)
    dec_params = (w1, b1, w2, b2, w3, b3)

    # one-time frozen-parameter packing (outside the jit hot path)
    prep = prepare_frozen_params(codebook, values, dec_params)

    out = jax.jit(dkvb_forward)(feat, prep)
    out = jax.block_until_ready(out)

    ref = ref_forward(feat, codebook, values, dec_params)

    assert out.shape == (B, NCLS)
    assert bool(jnp.all(jnp.isfinite(out)))
    # softmax rows sum to 1
    assert bool(jnp.allclose(jnp.sum(out, axis=1), 1.0, atol=1e-5))
    # matches the unfused / unfolded per-head reference
    assert bool(jnp.allclose(out, ref, atol=1e-4, rtol=1e-4))
    print("KERNEL_OK")
</pallas_src>

<mosaic_0001>
module attributes {stable_mosaic.version = 11 : i64} {
  func.func @dkvb_fused_kernel(%arg0: i32, %arg1: memref<8x16x128xf32, #tpu.memory_space<vmem>>, %arg2: memref<128x64xf32, #tpu.memory_space<vmem>>, %arg3: memref<1x64xf32, #tpu.memory_space<vmem>>, %arg4: memref<64x128xf32, #tpu.memory_space<vmem>>, %arg5: memref<128x16xf32, #tpu.memory_space<vmem>>, %arg6: memref<1x16xf32, #tpu.memory_space<vmem>>, %arg7: memref<8x16xf32, #tpu.memory_space<vmem>>) attributes {dimension_semantics = [#tpu.dimension_semantics<arbitrary>], iteration_bounds = array<i64: 1>, scalar_prefetch = 0 : i64, scratch_operands = 0 : i64, tpu.core_type = #tpu.core_type<tc>, window_params = [{pipeline_mode = #tpu.pipeline_mode<synchronous>, transform_indices = @transform_0, window_bounds = array<i64: 8, 16, 128>}, {pipeline_mode = #tpu.pipeline_mode<synchronous>, transform_indices = @transform_1, window_bounds = array<i64: 128, 64>}, {pipeline_mode = #tpu.pipeline_mode<synchronous>, transform_indices = @transform_2, window_bounds = array<i64: 1, 64>}, {pipeline_mode = #tpu.pipeline_mode<synchronous>, transform_indices = @transform_3, window_bounds = array<i64: 64, 128>}, {pipeline_mode = #tpu.pipeline_mode<synchronous>, transform_indices = @transform_4, window_bounds = array<i64: 128, 16>}, {pipeline_mode = #tpu.pipeline_mode<synchronous>, transform_indices = @transform_5, window_bounds = array<i64: 1, 16>}, {pipeline_mode = #tpu.pipeline_mode<synchronous>, transform_indices = @transform_6, window_bounds = array<i64: 8, 16>}]} {
    %c0 = arith.constant 0 : index
    %c0_0 = arith.constant 0 : index
    %c0_1 = arith.constant 0 : index
    %0 = vector.load %arg1[%c0, %c0_0, %c0_1] : memref<8x16x128xf32, #tpu.memory_space<vmem>>, vector<8x16x128xf32>
    %cst = arith.constant dense<0.000000e+00> : vector<8x128xf32>
    %1 = vector.multi_reduction <add>, %0, %cst [1] : vector<8x16x128xf32> to vector<8x128xf32>
    %cst_2 = arith.constant 1.600000e+01 : f32
    %2 = vector.broadcast %cst_2 : f32 to vector<8x128xf32>
    %3 = arith.divf %1, %2 : vector<8x128xf32>
    %c0_3 = arith.constant 0 : index
    %c0_4 = arith.constant 0 : index
    %4 = vector.load %arg2[%c0_3, %c0_4] : memref<128x64xf32, #tpu.memory_space<vmem>>, vector<128x64xf32>
    %cst_5 = arith.constant dense<0.000000e+00> : vector<8x64xf32>
    %5 = tpu.matmul %3, %4, %cst_5 {dimension_numbers = #tpu.dot_dimension_numbers<[1], [0], [0], [1], [0, 0, 1, 1], [], []>} : vector<8x128xf32>, vector<128x64xf32>, vector<8x64xf32> -> vector<8x64xf32>
    %c0_6 = arith.constant 0 : index
    %c0_7 = arith.constant 0 : index
    %6 = vector.load %arg3[%c0_6, %c0_7] : memref<1x64xf32, #tpu.memory_space<vmem>>, vector<1x64xf32>
    %cst_8 = arith.constant 2.000000e+00 : f32
    %7 = vector.broadcast %cst_8 : f32 to vector<8x64xf32>
    %8 = arith.mulf %7, %5 : vector<8x64xf32>
    %9 = vector.broadcast %6 : vector<1x64xf32> to vector<8x64xf32>
    %10 = arith.subf %9, %8 : vector<8x64xf32>
    %11 = vector.shape_cast %10 : vector<8x64xf32> to vector<8x8x8xf32>
    %cst_9 = arith.constant dense<0x7F800000> : vector<8x8xf32>
    %12 = vector.multi_reduction <minimumf>, %11, %cst_9 [2] : vector<8x8x8xf32> to vector<8x8xf32>
    %13 = vector.shape_cast %12 : vector<8x8xf32> to vector<8x8x1xf32>
    %14 = tpu.iota {dimensions = array<i32: 2>} : vector<8x8x8xi32>
    %15 = vector.broadcast %13 : vector<8x8x1xf32> to vector<8x8x8xf32>
    %16 = arith.cmpf oeq, %11, %15 : vector<8x8x8xf32>
    %c8_i32 = arith.constant 8 : i32
    %17 = vector.broadcast %c8_i32 : i32 to vector<8x8x8xi32>
    %18 = arith.select %16, %14, %17 : vector<8x8x8xi1>, vector<8x8x8xi32>
    %cst_10 = arith.constant dense<2147483647> : vector<8x8xi32>
    %19 = vector.multi_reduction <minsi>, %18, %cst_10 [2] : vector<8x8x8xi32> to vector<8x8xi32>
    %20 = vector.shape_cast %19 : vector<8x8xi32> to vector<8x8x1xi32>
    %21 = vector.broadcast %20 : vector<8x8x1xi32> to vector<8x8x8xi32>
    %22 = arith.cmpi eq, %14, %21 : vector<8x8x8xi32>
    %23 = arith.extui %22 : vector<8x8x8xi1> to vector<8x8x8xi32>
    %24 = arith.sitofp %23 : vector<8x8x8xi32> to vector<8x8x8xf32>
    %25 = vector.shape_cast %24 : vector<8x8x8xf32> to vector<8x64xf32>
    %c0_11 = arith.constant 0 : index
    %c0_12 = arith.constant 0 : index
    %26 = vector.load %arg4[%c0_11, %c0_12] : memref<64x128xf32, #tpu.memory_space<vmem>>, vector<64x128xf32>
    %cst_13 = arith.constant dense<0.000000e+00> : vector<8x128xf32>
    %27 = tpu.matmul %25, %26, %cst_13 {dimension_numbers = #tpu.dot_dimension_numbers<[1], [0], [0], [1], [0, 0, 1, 1], [], []>} : vector<8x64xf32>, vector<64x128xf32>, vector<8x128xf32> -> vector<8x128xf32>
    %c0_14 = arith.constant 0 : index
    %c0_15 = arith.constant 0 : index
    %28 = vector.load %arg5[%c0_14, %c0_15] : memref<128x16xf32, #tpu.memory_space<vmem>>, vector<128x16xf32>
    %cst_16 = arith.constant dense<0.000000e+00> : vector<8x16xf32>
    %29 = tpu.matmul %27, %28, %cst_16 {dimension_numbers = #tpu.dot_dimension_numbers<[1], [0], [0], [1], [0, 0, 1, 1], [], []>} : vector<8x128xf32>, vector<128x16xf32>, vector<8x16xf32> -> vector<8x16xf32>
    %c0_17 = arith.constant 0 : index
    %c0_18 = arith.constant 0 : index
    %30 = vector.load %arg6[%c0_17, %c0_18] : memref<1x16xf32, #tpu.memory_space<vmem>>, vector<1x16xf32>
    %31 = vector.broadcast %30 : vector<1x16xf32> to vector<8x16xf32>
    %32 = arith.addf %29, %31 : vector<8x16xf32>
    %cst_19 = arith.constant dense<0xFF800000> : vector<8xf32>
    %33 = vector.multi_reduction <maximumf>, %32, %cst_19 [1] : vector<8x16xf32> to vector<8xf32>
    %34 = vector.shape_cast %33 : vector<8xf32> to vector<8x1xf32>
    %35 = vector.broadcast %34 : vector<8x1xf32> to vector<8x16xf32>
    %36 = arith.subf %32, %35 : vector<8x16xf32>
    %37 = math.exp %36 : vector<8x16xf32>
    %cst_20 = arith.constant dense<0.000000e+00> : vector<8xf32>
    %38 = vector.multi_reduction <add>, %37, %cst_20 [1] : vector<8x16xf32> to vector<8xf32>
    %39 = vector.shape_cast %38 : vector<8xf32> to vector<8x1xf32>
    %40 = vector.broadcast %39 : vector<8x1xf32> to vector<8x16xf32>
    %41 = arith.divf %37, %40 : vector<8x16xf32>
    %c0_21 = arith.constant 0 : index
    %c0_22 = arith.constant 0 : index
    %42 = vector.load %arg7[%c0_21, %c0_22] : memref<8x16xf32, #tpu.memory_space<vmem>>, vector<8x16xf32>
    tpu.vector_store %arg7[%c0_21, %c0_22], %41 {strides = array<i32>} : memref<8x16xf32, #tpu.memory_space<vmem>>, vector<8x16xf32>,
    return
  }
  func.func @transform_0(%arg0: i32) -> (i32, i32, i32) {
    %c0_i32 = arith.constant 0 : i32
    %c0_i32_0 = arith.constant 0 : i32
    %c0_i32_1 = arith.constant 0 : i32
    %c0_i32_2 = arith.constant 0 : i32
    return %c0_i32, %c0_i32_0, %c0_i32_1 : i32, i32, i32
  }
  func.func @transform_1(%arg0: i32) -> (i32, i32) {
    %c0_i32 = arith.constant 0 : i32
    %c0_i32_0 = arith.constant 0 : i32
    %c0_i32_1 = arith.constant 0 : i32
    return %c0_i32, %c0_i32_0 : i32, i32
  }
  func.func @transform_2(%arg0: i32) -> (i32, i32) {
    %c0_i32 = arith.constant 0 : i32
    %c0_i32_0 = arith.constant 0 : i32
    %c0_i32_1 = arith.constant 0 : i32
    return %c0_i32, %c0_i32_0 : i32, i32
  }
  func.func @transform_3(%arg0: i32) -> (i32, i32) {
    %c0_i32 = arith.constant 0 : i32
    %c0_i32_0 = arith.constant 0 : i32
    %c0_i32_1 = arith.constant 0 : i32
    return %c0_i32, %c0_i32_0 : i32, i32
  }
  func.func @transform_4(%arg0: i32) -> (i32, i32) {
    %c0_i32 = arith.constant 0 : i32
    %c0_i32_0 = arith.constant 0 : i32
    %c0_i32_1 = arith.constant 0 : i32
    return %c0_i32, %c0_i32_0 : i32, i32
  }
  func.func @transform_5(%arg0: i32) -> (i32, i32) {
    %c0_i32 = arith.constant 0 : i32
    %c0_i32_0 = arith.constant 0 : i32
    %c0_i32_1 = arith.constant 0 : i32
    return %c0_i32, %c0_i32_0 : i32, i32
  }
  func.func @transform_6(%arg0: i32) -> (i32, i32) {
    %c0_i32 = arith.constant 0 : i32
    %c0_i32_0 = arith.constant 0 : i32
    %c0_i32_1 = arith.constant 0 : i32
    return %c0_i32, %c0_i32_0 : i32, i32
  }
}

</mosaic_0001>

<bundles_post_ra>
// kernel: dkvb_forward.1
= control target key start
LH: loop header
LB: loop body
LE: loop exit
PB: predicated region body
PF: predicated region fallthrough
CT: control target
= control target key end

     0   :  { %v826_v16 = vmov 16.0   ;;  %s1197_s0 = inlined_call_operand.vmem [shape: f32[8,16,128], index: 0, kind: input, shape index: {}]   ;;  %s1198_s1 = inlined_call_operand.vmem [shape: f32[128,64], index: 1, kind: input, shape index: {}]   ;;  %s1199_s2 = inlined_call_operand.vmem [shape: f32[1,64], index: 2, kind: input, shape index: {}]   ;;  %s1200_s3 = inlined_call_operand.vmem [shape: f32[64,128], index: 3, kind: input, shape index: {}]   ;;  %s1201_s4 = inlined_call_operand.vmem [shape: f32[128,16], index: 4, kind: input, shape index: {}]   ;;  %s1202_s5 = inlined_call_operand.vmem [shape: f32[1,16], index: 5, kind: input, shape index: {}]   ;;  %s1203_s6 = inlined_call_operand.hbm [shape: f32[8,16], index: 6, kind: output, shape index: {}]  }
   0x1   :  { %v126_v0 = vld [vmem:[%s1198_s1 + $0x78] sm:$0xff]  ;;  %v125_v1 = vld [vmem:[%s1198_s1 + $0x70] sm:$0xff]  ;;  %v124_v2 = vld [vmem:[%s1198_s1 + $0x68] sm:$0xff]  ;;  %794 = vrcp.f32 %v826_v16 }
   0x2   :  { %150 = vmatpush.msra.mxu0 %v126_v0  ;;  %v123_v3 = vld [vmem:[%s1198_s1 + $0x60] sm:$0xff]  ;;  %v122_v4 = vld [vmem:[%s1198_s1 + $0x58] sm:$0xff]  ;;  %v25_v6 = vld [vmem:[%s1197_s0 + $0x8] sm:$0xff] }
   0x3   :  { %v24_v5 = vld [vmem:[%s1197_s0] sm:$0xff]  ;;  %v121_v7 = vld [vmem:[%s1198_s1 + $0x50] sm:$0xff]  ;;  %v27_v9 = vld [vmem:[%s1197_s0 + $0x18] sm:$0xff] }
   0x4   :  { %151 = vmatpush.msra.mxu0 %v125_v1  ;;  %v26_v8 = vld [vmem:[%s1197_s0 + $0x10] sm:$0xff]  ;;  %v28_v10 = vld [vmem:[%s1197_s0 + $0x20] sm:$0xff]  ;;  %v40_v11 = vadd.f32 %v25_v6, %v24_v5  ;;  %v29_v12 = vld [vmem:[%s1197_s0 + $0x28] sm:$0xff] }
   0x5   :  { %v30_v13 = vld [vmem:[%s1197_s0 + $0x30] sm:$0xff]  ;;  %v31_v14 = vld [vmem:[%s1197_s0 + $0x38] sm:$0xff]  ;;  %v47_v15 = vadd.f32 %v27_v9, %v26_v8  ;;  %v120_v17 = vld [vmem:[%s1198_s1 + $0x48] sm:$0xff]  ;;  %v54_v22 = vadd.f32 %v29_v12, %v28_v10 }
   0x6   :  { %152 = vmatpush.msra.mxu0 %v124_v2  ;;  %v32_v18 = vld [vmem:[%s1197_s0 + $0x40] sm:$0xff]  ;;  %v33_v19 = vld [vmem:[%s1197_s0 + $0x48] sm:$0xff]  ;;  %v34_v20 = vld [vmem:[%s1197_s0 + $0x50] sm:$0xff]  ;;  %v41_v21 = vrot.slane %v40_v11, 4  ;;  %v61_v23 = vadd.f32 %v31_v14, %v30_v13 }
   0x7   :  { %v35_v24 = vld [vmem:[%s1197_s0 + $0x58] sm:$0xff]  ;;  %v36_v25 = vld [vmem:[%s1197_s0 + $0x60] sm:$0xff]  ;;  %v37_v26 = vld [vmem:[%s1197_s0 + $0x68] sm:$0xff]  ;;  %v48_v27 = vrot.slane %v47_v15, 4  ;;  %v68_v28 = vadd.f32 %v33_v19, %v32_v18  ;;  %v55_v32 = vrot.slane %v54_v22, 4 }
   0x8   :  { %153 = vmatpush.msra.mxu0 %v123_v3  ;;  %v38_v29 = vld [vmem:[%s1197_s0 + $0x70] sm:$0xff]  ;;  %v39_v30 = vld [vmem:[%s1197_s0 + $0x78] sm:$0xff]  ;;  %v42_v31 = vadd.f32 %v41_v21, %v40_v11  ;;  %v62_v33 = vrot.slane %v61_v23, 4  ;;  %v75_v34 = vadd.f32 %v35_v24, %v34_v20  ;;  %v82_v37 = vadd.f32 %v37_v26, %v36_v25 }
   0x9   :  { %v49_v35 = vadd.f32 %v48_v27, %v47_v15  ;;  %v69_v36 = vrot.slane %v68_v28, 4  ;;  %v89_v38 = vadd.f32 %v39_v30, %v38_v29 }
   0xa   :  { %154 = vmatpush.msra.mxu0 %v122_v4 }
   0xc   :  { %155 = vmatpush.msra.mxu0 %v121_v7 }
   0xd   :  { %11 = vsyncpa [#allocation3], 0  ;;  %v119_v39 = vld [vmem:[%s1198_s1 + $0x40] sm:$0xff]  ;;  %v43_v40 = vrot.slane %v42_v31, 2  ;;  %v56_v41 = vadd.f32 %v55_v32, %v54_v22  ;;  %v63_v42 = vadd.f32 %v62_v33, %v61_v23  ;;  %v76_v43 = vrot.slane %v75_v34, 4  ;;  %v795_v44 = vpop.eup %794  ;;  %v118_v49 = vld [vmem:[%s1198_s1 + $0x38] sm:$0xff] }
   0xe   :  { %156 = vmatpush.msra.mxu0 %v120_v17  ;;  %v50_v45 = vrot.slane %v49_v35, 2  ;;  %v70_v46 = vadd.f32 %v69_v36, %v68_v28  ;;  %v83_v47 = vrot.slane %v82_v37, 4  ;;  %v90_v48 = vrot.slane %v89_v38, 4  ;;  %v117_v58 = vld [vmem:[%s1198_s1 + $0x30] sm:$0xff]  ;;  %v116_v2 = vld [vmem:[%s1198_s1 + $0x28] sm:$0xff]  ;;  %v115_v10 = vld [vmem:[%s1198_s1 + $0x20] sm:$0xff] }
   0xf   :  { %v44_v50 = vadd.f32 %v43_v40, %v42_v31  ;;  %v57_v51 = vrot.slane %v56_v41, 2  ;;  %v64_v52 = vrot.slane %v63_v42, 2  ;;  %v77_v53 = vadd.f32 %v76_v43, %v75_v34  ;;  %v114_v14 = vld [vmem:[%s1198_s1 + $0x18] sm:$0xff]  ;;  %v113_v22 = vld [vmem:[%s1198_s1 + $0x10] sm:$0xff]  ;;  %v112_v26 = vld [vmem:[%s1198_s1 + $0x8] sm:$0xff]  ;;  %s827_s13 = smov 120  }
  0x10   :  { %157 = vmatpush.msra.mxu0 %v119_v39  ;;  %v51_v54 = vadd.f32 %v50_v45, %v49_v35  ;;  %v71_v55 = vrot.slane %v70_v46, 2  ;;  %v84_v56 = vadd.f32 %v83_v47, %v82_v37  ;;  %v91_v57 = vadd.f32 %v90_v48, %v89_v38  ;;  %v111_v34 = vld [vmem:[%s1198_s1] sm:$0xff]  ;;  %s828_s14 = smov 104   ;;  %s829_s15 = smov 112  }
  0x11   :  { %v58_v59 = vadd.f32 %v57_v51, %v56_v41  ;;  %v65_v60 = vadd.f32 %v64_v52, %v63_v42  ;;  %v78_v61 = vrot.slane %v77_v53, 2  ;;  %v97_v62 = vmul.f32 16.0, %v795_v44  ;;  %s830_s16 = smov 88   ;;  %s831_s17 = smov 80  }
  0x12   :  { %158 = vmatpush.msra.mxu0 %v118_v49  ;;  %v72_v63 = vadd.f32 %v71_v55, %v70_v46  ;;  %v85_v0 = vrot.slane %v84_v56, 2  ;;  %v92_v1 = vrot.slane %v91_v57, 2  ;;  %v45_v3 = vrot.slane %v44_v50, 1  ;;  %v792_v46 = vld [vmem:[%s1199_s2] ss:$0 sm:$0xff]  ;;  %s832_s18 = smov 96  }
  0x13   :  { %v52_v4 = vrot.slane %v51_v54, 1  ;;  %v79_v5 = vadd.f32 %v78_v61, %v77_v53  ;;  %v59_v6 = vrot.slane %v58_v59, 1  ;;  %v66_v7 = vrot.slane %v65_v60, 1  ;;  %s833_s19 = smov 72   ;;  %s837_s2 = smov 24  }
  0x14   :  { %159 = vmatpush.msra.mxu0 %v117_v58  ;;  %v86_v8 = vadd.f32 %v85_v0, %v84_v56  ;;  %v93_v9 = vadd.f32 %v92_v1, %v91_v57  ;;  %v73_v11 = vrot.slane %v72_v63, 1  ;;  %v98_v12 = vsub.f32 1.0, %v97_v62  ;;  %s838_s20 = smov 16   ;;  %s839_s0 = smov 8  }
  0x15   :  { %v80_v13 = vrot.slane %v79_v5, 1  ;;  %vm101_vm0 = vweird.f32 %v795_v44  ;;  %v46_v18 = vadd.f32 %v45_v3, %v44_v50  ;;  %v53_v19 = vadd.f32 %v52_v4, %v51_v54  ;;  %s840_s21 = smov 56   ;;  %s841_s22 = smov 40  }
  0x16   :  { %160 = vmatpush.msra.mxu0 %v116_v2  ;;  %v87_v15 = vrot.slane %v86_v8, 1  ;;  %v94_v16 = vrot.slane %v93_v9, 1  ;;  %v99_v17 = vmul.f32 %v795_v44, %v98_v12  ;;  %v60_v20 = vadd.f32 %v59_v6, %v58_v59  ;;  %s842_s23 = smov 32   ;;  %s843_s24 = smov 48  }
  0x17   :  { %v67_v21 = vadd.f32 %v66_v7, %v65_v60  ;;  %v74_v23 = vadd.f32 %v73_v11, %v72_v63  ;;  %v81_v25 = vadd.f32 %v80_v13, %v79_v5  ;;  %vm135_vm1 = vcmask 1041409  }
  0x18   :  { %161 = vmatpush.msra.mxu0 %v115_v10  ;;  %v100_v24 = vadd.f32 %v795_v44, %v99_v17  ;;  %v88_v27 = vadd.f32 %v87_v15, %v86_v8  ;;  %v95_v28 = vadd.f32 %v94_v16, %v93_v9  ;;  %vm137_vm2 = vcmask 1042434  }
  0x19   :  { %vm139_vm3 = vcmask 1043459   ;;  %vm141_vm4 = vcmask 1044484   ;;  %vm143_vm5 = vcmask 1045509   ;;  %vm145_vm6 = vcmask 1046534  }
  0x1a   :  { %162 = vmatpush.msra.mxu0 %v114_v14  ;;  %v102_v29 = vsel %vm101_vm0, %v795_v44, %v100_v24  ;;  %vm147_vm7 = vcmask 1047559   ;;  %v834_v50 = vmov 1983009808   ;;  %vm199_vm8 = vcmask 1047556  }
  0x1b   :  { %v103_v30 = vmul.f32 %v102_v29, %v46_v18  ;;  %v104_v31 = vmul.f32 %v102_v29, %v53_v19  ;;  %v105_v32 = vmul.f32 %v102_v29, %v60_v20  ;;  %v106_v33 = vmul.f32 %v102_v29, %v67_v21 }
  0x1c   :  { %163 = vmatpush.msra.mxu0 %v113_v22  ;;  %v107_v35 = vmul.f32 %v102_v29, %v74_v23  ;;  %v108_v36 = vmul.f32 %v102_v29, %v81_v25  ;;  %v109_v38 = vmul.f32 %v102_v29, %v88_v27  ;;  %v110_v40 = vmul.f32 %v102_v29, %v95_v28 }
  0x1d   :  { %v136_v37 = vsel %vm135_vm1, %v104_v31, %v103_v30  ;;  %v204_v51 = vunpack.c.l.s4 %v834_v50  ;;  %v835_v1 = vmov 1934713408   ;;  %vm311_vm9 = vcmask 64512  }
  0x1e   :  { %164 = vmatpush.msra.mxu0 %v112_v26  ;;  %v138_v39 = vsel %vm137_vm2, %v105_v32, %v136_v37  ;;  %v252_v2 = vunpack.c.l.s4 %v835_v1 }
  0x1f   :  { %v140_v41 = vsel %vm139_vm3, %v106_v33, %v138_v39  ;;  %v980_v56 = vunpack.c.0.s8 %v204_v51 }
  0x20   :  { %165 = vmatpush.msra.mxu0 %v111_v34  ;;  %v142_v42 = vsel %vm141_vm4, %v107_v35, %v140_v41  ;;  %v992_v14 = vunpack.c.0.s8 %v252_v2 }
  0x21   :  { %v144_v43 = vsel %vm143_vm5, %v108_v36, %v142_v42 }
  0x22   :  { %v146_v44 = vsel %vm145_vm6, %v109_v38, %v144_v43 }
  0x23   :  { %v148_v45 = vsel %vm147_vm7, %v110_v40, %v146_v44 }
  0x24   :  { %166 = vmatmul.f32.vlgmr.msra.gmra.mxu0 %v148_v45 }
  0xa1   :  { %v167_v47 = vpop.f32.mrf.mxu0 }
  0xa2   :  { %v171_v48 = vmul.f32 2.0, %v167_v47 }
  0xa4   :  { %v175_v49 = vsub.f32 %v792_v46, %v171_v48 }
  0xa6   :  { %177 = vrot.lane.b32.xlu2 %v175_v49, %s827_s13  ;;  %183 = vrot.lane.b32.xlu1 %v175_v49, %s828_s14  ;;  %v201_v54 = vrot.slane %v175_v49, 4 }
  0xa7   :  { %180 = vrot.lane.b32.xlu0 %v175_v49, %s829_s15 }
  0xae   :  { %189 = vrot.lane.b32.xlu2 %v175_v49, %s830_s16  ;;  %192 = vrot.lane.b32.xlu1 %v175_v49, %s831_s17 }
  0xaf   :  { %186 = vrot.lane.b32.xlu0 %v175_v49, %s832_s18 }
  0xb7   :  { %195 = vrot.lane.b32.xlu0 %v175_v49, %s833_s19 }
 0x100   :  { %v178_v55 = vpop.permute.xlu2 %177 }
 0x101   :  { %v213_v61 = vrot.slane %v178_v55, 4 }
 0x108   :  { %v190_v10 = vpop.permute.xlu2 %189 }
 0x109   :  { %v237_v18 = vrot.slane %v190_v10, 4 }
 0x118   :  { %v184_v52 = vpop.permute.xlu1 %183 }
 0x119   :  { %v181_v53 = vpop.permute.xlu0 %180  ;;  %v211_v57 = vrot.slane %v184_v52, 4  ;;  %v214_v3 = vsel %vm199_vm8, %v184_v52, %v213_v61 }
 0x11a   :  { %v202_v58 = vsel %vm199_vm8, %v181_v53, %v201_v54  ;;  %v198_v59 = vrot.slane %v181_v53, 4  ;;  %v222_v11 = vperm.slane %v214_v3, %v980_v56 }
 0x11b   :  { %v210_v60 = vperm.slane %v202_v58, %v980_v56  ;;  %v212_v62 = vsel %vm199_vm8, %v211_v57, %v178_v55 }
 0x11c   :  { %v200_v4 = vsel %vm199_vm8, %v198_v59, %v175_v49  ;;  %v218_v7 = vperm.slane %v212_v62, %v980_v56  ;;  %v259_v28 = vrot.slane %v222_v11, 4 }
 0x11d   :  { %v261_v8 = vrot.slane %v210_v60, 4  ;;  %v206_v12 = vperm.slane %v200_v4, %v980_v56 }
 0x11e   :  { %v247_v15 = vrot.slane %v218_v7, 4  ;;  %v260_v44 = vsel %vm199_vm8, %v259_v28, %v210_v60 }
 0x11f   :  { %v262_v17 = vsel %vm199_vm8, %v222_v11, %v261_v8  ;;  %v249_v19 = vrot.slane %v206_v12, 4  ;;  %v266_v55 = vperm.slane %v260_v44, %v992_v14  ;;  %v336_v8 = vlaneseq }
 0x120   :  { %v193_v63 = vpop.permute.xlu1 %192  ;;  %v270_v24 = vperm.slane %v262_v17, %v992_v14  ;;  %v248_v27 = vsel %vm199_vm8, %v247_v15, %v206_v12 }
 0x121   :  { %v187_v0 = vpop.permute.xlu0 %186  ;;  %v223_v5 = vrot.slane %v193_v63, 4  ;;  %v250_v33 = vsel %vm199_vm8, %v218_v7, %v249_v19  ;;  %v254_v36 = vperm.slane %v248_v27, %v992_v14  ;;  %v305_v61 = vrot.slane %v266_v55, 4 }
 0x122   :  { %v225_v6 = vrot.slane %v187_v0, 4  ;;  %v309_v35 = vrot.slane %v270_v24, 4  ;;  %v258_v42 = vperm.slane %v250_v33, %v992_v14 }
 0x123   :  { %v224_v13 = vsel %vm199_vm8, %v223_v5, %v187_v0  ;;  %v297_v49 = vrot.slane %v254_v36, 4 }
 0x124   :  { %v226_v9 = vsel %vm199_vm8, %v193_v63, %v225_v6  ;;  %v230_v20 = vperm.slane %v224_v13, %v980_v56  ;;  %v301_v53 = vrot.slane %v258_v42, 4 }
 0x125   :  { %v234_v16 = vperm.slane %v226_v9, %v980_v56  ;;  %v1032_v9 = vand.u32 127, %v336_v8 }
 0x126   :  { %v273_v30 = vrot.slane %v230_v20, 4 }
 0x127   :  { %v285_v25 = vrot.slane %v234_v16, 4 }
 0x129   :  { %v196_v21 = vpop.permute.xlu0 %195 }
 0x12a   :  { %v235_v22 = vrot.slane %v196_v21, 4  ;;  %v238_v23 = vsel %vm199_vm8, %v196_v21, %v237_v18 }
 0x12b   :  { %v246_v26 = vperm.slane %v238_v23, %v980_v56 }
 0x12c   :  { %v236_v29 = vsel %vm199_vm8, %v235_v22, %v190_v10 }
 0x12d   :  { %v242_v31 = vperm.slane %v236_v29, %v980_v56  ;;  %v286_v32 = vsel %vm199_vm8, %v246_v26, %v285_v25  ;;  %v283_v38 = vrot.slane %v246_v26, 4 }
 0x12e   :  { %v294_v34 = vperm.slane %v286_v32, %v992_v14 }
 0x12f   :  { %v271_v37 = vrot.slane %v242_v31, 4  ;;  %v274_v39 = vsel %vm199_vm8, %v242_v31, %v273_v30  ;;  %v284_v51 = vsel %vm199_vm8, %v283_v38, %v234_v16 }
 0x130   :  { %v310_v40 = vsel %vm199_vm8, %v294_v34, %v309_v35  ;;  %v307_v41 = vrot.slane %v294_v34, 4  ;;  %v282_v43 = vperm.slane %v274_v39, %v992_v14  ;;  %v290_v59 = vperm.slane %v284_v51, %v992_v14 }
 0x131   :  { %v333_v45 = vsel %vm311_vm9, %v310_v40, inf  ;;  %v272_v46 = vsel %vm199_vm8, %v271_v37, %v230_v20 }
 0x132   :  { %334 = vmin.xlane.f32.xlu1 %v333_v45  ;;  %v308_v47 = vsel %vm199_vm8, %v307_v41, %v270_v24  ;;  %v278_v48 = vperm.slane %v272_v46, %v992_v14  ;;  %v299_v54 = vrot.slane %v282_v43, 4  ;;  %v302_v58 = vsel %vm199_vm8, %v282_v43, %v301_v53 }
 0x133   :  { %v330_v50 = vsel %vm311_vm9, %v308_v47, inf  ;;  %v321_v62 = vsel %vm311_vm9, %v302_v58, inf  ;;  %v306_v63 = vsel %vm199_vm8, %v290_v59, %v305_v61  ;;  %v303_v2 = vrot.slane %v290_v59, 4 }
 0x134   :  { %331 = vmin.xlane.f32.xlu2 %v330_v50  ;;  %v298_v52 = vsel %vm199_vm8, %v278_v48, %v297_v49  ;;  %v300_v60 = vsel %vm199_vm8, %v299_v54, %v258_v42  ;;  %v295_v0 = vrot.slane %v278_v48, 4  ;;  %v327_v3 = vsel %vm311_vm9, %v306_v63, inf }
 0x135   :  { %v315_v57 = vsel %vm311_vm9, %v298_v52, inf  ;;  %v318_v1 = vsel %vm311_vm9, %v300_v60, inf  ;;  %v304_v5 = vsel %vm199_vm8, %v303_v2, %v266_v55 }
 0x136   :  { %316 = vmin.xlane.f32.xlu0 %v315_v57  ;;  %v296_v4 = vsel %vm199_vm8, %v295_v0, %v254_v36  ;;  %v324_v7 = vsel %vm311_vm9, %v304_v5, inf }
 0x137   :  { %v312_v6 = vsel %vm311_vm9, %v296_v4, inf }
 0x13a   :  { %322 = vmin.xlane.f32.xlu1 %v321_v62 }
 0x13c   :  { %319 = vmin.xlane.f32.xlu2 %v318_v1 }
 0x13e   :  { %328 = vmin.xlane.f32.xlu0 %v327_v3 }
 0x142   :  { %313 = vmin.xlane.f32.xlu1 %v312_v6 }
 0x144   :  { %325 = vmin.xlane.f32.xlu2 %v324_v7 }
 0x1a5   :  { %v335_v10 = vpop.xlane.xlu1 %334 }
 0x1a6   :  { %vm345_vm10 = vcmp.eq.f32.partialorder %v310_v40, %v335_v10 }
 0x1a7   :  { %v353_v11 = vsel %vm345_vm10, %v1032_v9, 8  ;;  %v332_v12 = vpop.xlane.xlu2 %331 }
 0x1a8   :  { %v459_v13 = vsel %vm311_vm9, %v353_v11, 2147483647  ;;  %vm344_vm11 = vcmp.eq.f32.partialorder %v308_v47, %v332_v12 }
 0x1a9   :  { %v352_v15 = vsel %vm344_vm11, %v1032_v9, 8  ;;  %v317_v16 = vpop.xlane.xlu0 %316  ;;  %v461_v17 = vshra.s32 %v459_v13, 16  ;;  %v460_v51 = vand.u32 65535, %v459_v13 }
 0x1aa   :  { %vm339_vm12 = vcmp.eq.f32.partialorder %v298_v52, %v317_v16  ;;  %v444_v20 = vsel %vm311_vm9, %v352_v15, 2147483647 }
 0x1ab   :  { %v347_v18 = vsel %vm339_vm12, %v1032_v9, 8  ;;  %v463_v19 = vcvt.s32.f32 %v461_v17  ;;  %v446_v27 = vshra.s32 %v444_v20, 16  ;;  %v462_v53 = vcvt.s32.f32 %v460_v51 }
 0x1ac   :  { %v369_v21 = vsel %vm311_vm9, %v347_v18, 2147483647  ;;  %v445_v59 = vand.u32 65535, %v444_v20 }
 0x1ad   :  { %v323_v22 = vpop.xlane.xlu1 %322  ;;  %464 = vmin.xlane.f32.xlu0 %v463_v19  ;;  %v371_v23 = vshra.s32 %v369_v21, 16  ;;  %v448_v32 = vcvt.s32.f32 %v446_v27  ;;  %v370_v54 = vand.u32 65535, %v369_v21 }
 0x1ae   :  { %vm341_vm13 = vcmp.eq.f32.partialorder %v302_v58, %v323_v22  ;;  %v447_v0 = vcvt.s32.f32 %v445_v59 }
 0x1af   :  { %v349_v24 = vsel %vm341_vm13, %v1032_v9, 8  ;;  %v320_v25 = vpop.xlane.xlu2 %319  ;;  %v373_v26 = vcvt.s32.f32 %v371_v23  ;;  %v372_v58 = vcvt.s32.f32 %v370_v54 }
 0x1b0   :  { %v399_v28 = vsel %vm311_vm9, %v349_v24, 2147483647  ;;  %vm340_vm14 = vcmp.eq.f32.partialorder %v300_v60, %v320_v25 }
 0x1b1   :  { %v348_v29 = vsel %vm340_vm14, %v1032_v9, 8  ;;  %374 = vmin.xlane.f32.xlu1 %v373_v26  ;;  %v401_v30 = vshra.s32 %v399_v28, 16  ;;  %v329_v31 = vpop.xlane.xlu0 %328  ;;  %v400_v60 = vand.u32 65535, %v399_v28 }
 0x1b2   :  { %v384_v34 = vsel %vm311_vm9, %v348_v29, 2147483647  ;;  %vm343_vm15 = vcmp.eq.f32.partialorder %v306_v63, %v329_v31 }
 0x1b3   :  { %v403_v33 = vcvt.s32.f32 %v401_v30  ;;  %v386_v38 = vshra.s32 %v384_v34, 16  ;;  %v351_v40 = vsel %vm343_vm15, %v1032_v9, 8  ;;  %v402_v1 = vcvt.s32.f32 %v400_v60 }
 0x1b4   :  { %v429_v47 = vsel %vm311_vm9, %v351_v40, 2147483647 }
 0x1b5   :  { %v314_v35 = vpop.xlane.xlu1 %313  ;;  %449 = vmin.xlane.f32.xlu0 %v448_v32  ;;  %404 = vmin.xlane.f32.xlu2 %v403_v33  ;;  %v388_v45 = vcvt.s32.f32 %v386_v38  ;;  %v431_v49 = vshra.s32 %v429_v47, 16  ;;  %v430_v18 = vand.u32 65535, %v429_v47 }
 0x1b6   :  { %vm338_vm0 = vcmp.eq.f32.partialorder %v296_v4, %v314_v35 }
 0x1b7   :  { %v346_v36 = vsel %vm338_vm0, %v1032_v9, 8  ;;  %v326_v37 = vpop.xlane.xlu2 %325  ;;  %v433_v50 = vcvt.s32.f32 %v431_v49  ;;  %v432_v20 = vcvt.s32.f32 %v430_v18 }
 0x1b8   :  { %v354_v39 = vsel %vm311_vm9, %v346_v36, 2147483647  ;;  %vm342_vm1 = vcmp.eq.f32.partialorder %v304_v5, %v326_v37  ;;  %v385_v5 = vand.u32 65535, %v384_v34  ;;  %v836_v34 = vmov 0.0  }
 0x1b9   :  { %v350_v41 = vsel %vm342_vm1, %v1032_v9, 8  ;;  %v356_v42 = vshra.s32 %v354_v39, 16  ;;  %v355_v4 = vand.u32 65535, %v354_v39 }
 0x1ba   :  { %v414_v43 = vsel %vm311_vm9, %v350_v41, 2147483647  ;;  %v387_v11 = vcvt.s32.f32 %v385_v5 }
 0x1bb   :  { %v358_v44 = vcvt.s32.f32 %v356_v42  ;;  %v416_v46 = vshra.s32 %v414_v43, 16  ;;  %v415_v6 = vand.u32 65535, %v414_v43  ;;  %v357_v10 = vcvt.s32.f32 %v355_v4 }
 0x1bd   :  { %359 = vmin.xlane.f32.xlu0 %v358_v44  ;;  %389 = vmin.xlane.f32.xlu2 %v388_v45  ;;  %v418_v48 = vcvt.s32.f32 %v416_v46  ;;  %v417_v16 = vcvt.s32.f32 %v415_v6 }
 0x1bf   :  { %419 = vmin.xlane.f32.xlu1 %v418_v48 }
 0x1c5   :  { %434 = vmin.xlane.f32.xlu2 %v433_v50 }
 0x220   :  { %v1050_v52 = vpop.xlane.xlu0 %464 }
 0x221   :  { %vm466_vm2 = vcmp.eq.f32.partialorder %v463_v19, %v1050_v52  ;;  %v471_v42 = vcvt.f32.s32 %v1050_v52 }
 0x222   :  { %v467_v55 = vsel %vm466_vm2, %v462_v53, inf }
 0x223   :  { %468 = vmin.xlane.f32.xlu2 %v467_v55 }
 0x224   :  { %v375_v57 = vpop.xlane.xlu1 %374 }
 0x225   :  { %vm376_vm3 = vcmp.eq.f32.partialorder %v373_v26, %v375_v57  ;;  %v381_v23 = vcvt.f32.s32 %v375_v57 }
 0x226   :  { %v377_v61 = vsel %vm376_vm3, %v372_v58, inf  ;;  %v472_v58 = vshll.u32 %v471_v42, 16 }
 0x227   :  { %378 = vmin.xlane.f32.xlu0 %v377_v61  ;;  %v382_v25 = vshll.u32 %v381_v23, 16 }
 0x228   :  { %v450_v62 = vpop.xlane.xlu0 %449  ;;  %v405_v63 = vpop.xlane.xlu2 %404 }
 0x229   :  { %vm451_vm4 = vcmp.eq.f32.partialorder %v448_v32, %v450_v62  ;;  %vm406_vm5 = vcmp.eq.f32.partialorder %v403_v33, %v405_v63  ;;  %v411_v26 = vcvt.f32.s32 %v405_v63  ;;  %v456_v29 = vcvt.f32.s32 %v450_v62 }
 0x22a   :  { %v452_v2 = vsel %vm451_vm4, %v447_v0, inf  ;;  %v407_v3 = vsel %vm406_vm5, %v402_v1, inf  ;;  %vm641_vm4 = vcmask 195584   ;;  %vm643_vm5 = vcmask 261120  }
 0x22b   :  { %453 = vmin.xlane.f32.xlu2 %v452_v2  ;;  %408 = vmin.xlane.f32.xlu1 %v407_v3  ;;  %v412_v32 = vshll.u32 %v411_v26, 16  ;;  %v457_v38 = vshll.u32 %v456_v29, 16 }
 0x230   :  { %v360_v7 = vpop.xlane.xlu0 %359  ;;  %v390_v8 = vpop.xlane.xlu2 %389 }
 0x231   :  { %vm361_vm6 = vcmp.eq.f32.partialorder %v358_v44, %v360_v7  ;;  %vm391_vm7 = vcmp.eq.f32.partialorder %v388_v45, %v390_v8  ;;  %v366_v39 = vcvt.f32.s32 %v360_v7  ;;  %v396_v40 = vcvt.f32.s32 %v390_v8 }
 0x232   :  { %v420_v12 = vpop.xlane.xlu1 %419  ;;  %v362_v13 = vsel %vm361_vm6, %v357_v10, inf  ;;  %v392_v15 = vsel %vm391_vm7, %v387_v11, inf  ;;  %vm647_vm6 = vcmask 392192   ;;  %vm649_vm7 = vcmask 457728  }
 0x233   :  { %363 = vmin.xlane.f32.xlu2 %v362_v13  ;;  %393 = vmin.xlane.f32.xlu1 %v392_v15  ;;  %vm421_vm10 = vcmp.eq.f32.partialorder %v418_v48, %v420_v12  ;;  %v426_v45 = vcvt.f32.s32 %v420_v12  ;;  %v367_v48 = vshll.u32 %v366_v39, 16  ;;  %v397_v53 = vshll.u32 %v396_v40, 16 }
 0x234   :  { %v422_v17 = vsel %vm421_vm10, %v417_v16, inf  ;;  %vm659_vm10 = vcmask 523264  }
 0x235   :  { %423 = vmin.xlane.f32.xlu0 %v422_v17  ;;  %v427_v59 = vshll.u32 %v426_v45, 16 }
 0x238   :  { %v1053_v19 = vpop.xlane.xlu2 %434 }
 0x239   :  { %vm436_vm11 = vcmp.eq.f32.partialorder %v433_v50, %v1053_v19  ;;  %v441_v63 = vcvt.f32.s32 %v1053_v19 }
 0x23a   :  { %v437_v21 = vsel %vm436_vm11, %v432_v20, inf }
 0x23b   :  { %438 = vmin.xlane.f32.xlu1 %v437_v21  ;;  %v442_v13 = vshll.u32 %v441_v63, 16 }
 0x296   :  { %v469_v22 = vpop.xlane.xlu2 %468 }
 0x297   :  { %v470_v49 = vcvt.f32.s32 %v469_v22 }
 0x299   :  { %v473_v0 = vadd.s32 %v472_v58, %v470_v49 }
 0x29a   :  { %v379_v24 = vpop.xlane.xlu0 %378 }
 0x29b   :  { %v380_v27 = vcvt.f32.s32 %v379_v24  ;;  %vm481_vm2 = vcmp.eq.s32.totalorder %v1032_v9, %v473_v0 }
 0x29c   :  { %v771_v22 = vsel %vm481_vm2, 1.0, %v836_v34 }
 0x29d   :  { %v383_v28 = vadd.s32 %v382_v25, %v380_v27 }
 0x29e   :  { %v409_v30 = vpop.xlane.xlu1 %408  ;;  %v454_v31 = vpop.xlane.xlu2 %453 }
 0x29f   :  { %vm475_vm12 = vcmp.eq.s32.totalorder %v1032_v9, %v383_v28  ;;  %v410_v33 = vcvt.f32.s32 %v409_v30  ;;  %v455_v36 = vcvt.f32.s32 %v454_v31 }
 0x2a0   :  { %v765_v35 = vsel %vm475_vm12, 1.0, %v836_v34 }
 0x2a1   :  { %v413_v37 = vadd.s32 %v412_v32, %v410_v33  ;;  %v512_v41 = vrot.slane %v765_v35, 4  ;;  %v458_v44 = vadd.s32 %v457_v38, %v455_v36  ;;  %v534_v32 = vrot.slane %v771_v22, 4 }
 0x2a3   :  { %vm477_vm13 = vcmp.eq.s32.totalorder %v1032_v9, %v413_v37  ;;  %vm480_vm14 = vcmp.eq.s32.totalorder %v1032_v9, %v458_v44 }
 0x2a4   :  { %v767_v43 = vsel %vm477_vm13, 1.0, %v836_v34  ;;  %v770_v1 = vsel %vm480_vm14, 1.0, %v836_v34 }
 0x2a5   :  { %v510_v46 = vrot.slane %v767_v43, 4  ;;  %v513_v47 = vsel %vm199_vm8, %v767_v43, %v512_v41  ;;  %v522_v10 = vrot.slane %v770_v1, 4 }
 0x2a6   :  { %v394_v50 = vpop.xlane.xlu1 %393  ;;  %v364_v51 = vpop.xlane.xlu2 %363  ;;  %v521_v3 = vperm.slane %v513_v47, %v980_v56 }
 0x2a7   :  { %v511_v54 = vsel %vm199_vm8, %v510_v46, %v765_v35  ;;  %v395_v55 = vcvt.f32.s32 %v394_v50  ;;  %v365_v57 = vcvt.f32.s32 %v364_v51 }
 0x2a8   :  { %v424_v52 = vpop.xlane.xlu0 %423  ;;  %v517_v6 = vperm.slane %v511_v54, %v980_v56  ;;  %v558_v23 = vrot.slane %v521_v3, 4 }
 0x2a9   :  { %v398_v60 = vadd.s32 %v397_v53, %v395_v55  ;;  %v368_v61 = vadd.s32 %v367_v48, %v365_v57  ;;  %v425_v62 = vcvt.f32.s32 %v424_v52 }
 0x2aa   :  { %v546_v24 = vrot.slane %v517_v6, 4 }
 0x2ab   :  { %vm476_vm15 = vcmp.eq.s32.totalorder %v1032_v9, %v398_v60  ;;  %vm474_vm0 = vcmp.eq.s32.totalorder %v1032_v9, %v368_v61  ;;  %v428_v2 = vadd.s32 %v427_v59, %v425_v62 }
 0x2ac   :  { %v766_v4 = vsel %vm476_vm15, 1.0, %v836_v34  ;;  %v764_v5 = vsel %vm474_vm0, 1.0, %v836_v34 }
 0x2ad   :  { %v498_v7 = vrot.slane %v766_v4, 4  ;;  %v500_v8 = vrot.slane %v764_v5, 4  ;;  %vm478_vm1 = vcmp.eq.s32.totalorder %v1032_v9, %v428_v2 }
 0x2ae   :  { %v768_v11 = vsel %vm478_vm1, 1.0, %v836_v34  ;;  %v439_v12 = vpop.xlane.xlu1 %438 }
 0x2af   :  { %v499_v15 = vsel %vm199_vm8, %v498_v7, %v764_v5  ;;  %v501_v16 = vsel %vm199_vm8, %v766_v4, %v500_v8  ;;  %v524_v17 = vrot.slane %v768_v11, 4  ;;  %v523_v20 = vsel %vm199_vm8, %v522_v10, %v768_v11  ;;  %v657_v10 = vld [vmem:[%s1200_s3 + $0x30] sm:$0xff]  ;;  %v656_v11 = vld [vmem:[%s1200_s3 + $0x28] sm:$0xff] }
 0x2b0   :  { %v505_v18 = vperm.slane %v499_v15, %v980_v56  ;;  %v509_v19 = vperm.slane %v501_v16, %v980_v56  ;;  %v440_v21 = vcvt.f32.s32 %v439_v12  ;;  %v529_v28 = vperm.slane %v523_v20, %v980_v56  ;;  %v655_v12 = vld [vmem:[%s1200_s3 + $0x20] sm:$0xff]  ;;  %v653_v15 = vld [vmem:[%s1200_s3 + $0x10] sm:$0xff]  ;;  %v652_v16 = vld [vmem:[%s1200_s3 + $0x8] sm:$0xff] }
 0x2b1   :  { %v525_v26 = vsel %vm199_vm8, %v770_v1, %v524_v17  ;;  %v651_v17 = vld [vmem:[%s1200_s3] sm:$0xff]  ;;  %v696_v20 = vld [vmem:[%s1201_s4 + $0x68] sm:$0xff] }
 0x2b2   :  { %v548_v25 = vrot.slane %v505_v18, 4  ;;  %v443_v27 = vadd.s32 %v442_v13, %v440_v21  ;;  %v547_v29 = vsel %vm199_vm8, %v546_v24, %v505_v18  ;;  %v560_v30 = vrot.slane %v509_v19, 4  ;;  %v654_v13 = vld [vmem:[%s1200_s3 + $0x18] sm:$0xff]  ;;  %v695_v21 = vld [vmem:[%s1201_s4 + $0x60] sm:$0xff]  ;;  %v692_v24 = vld [vmem:[%s1201_s4 + $0x48] sm:$0xff] }
 0x2b3   :  { %v559_v31 = vsel %vm199_vm8, %v558_v23, %v509_v19  ;;  %v533_v35 = vperm.slane %v525_v26, %v980_v56  ;;  %v553_v41 = vperm.slane %v547_v29, %v992_v14  ;;  %v572_v42 = vrot.slane %v529_v28, 4  ;;  %v698_v18 = vld [vmem:[%s1201_s4 + $0x78] sm:$0xff]  ;;  %v697_v19 = vld [vmem:[%s1201_s4 + $0x70] sm:$0xff] }
 0x2b4   :  { %vm479_vm3 = vcmp.eq.s32.totalorder %v1032_v9, %v443_v27  ;;  %v549_v33 = vsel %vm199_vm8, %v517_v6, %v548_v25  ;;  %v561_v37 = vsel %vm199_vm8, %v521_v3, %v560_v30  ;;  %v565_v51 = vperm.slane %v559_v31, %v992_v14  ;;  %703 = vmatpush.msra.mxu2 %v698_v18  ;;  %v693_v23 = vld [vmem:[%s1201_s4 + $0x50] sm:$0xff]  ;;  %v691_v25 = vld [vmem:[%s1201_s4 + $0x40] sm:$0xff]  ;;  %v690_v27 = vld [vmem:[%s1201_s4 + $0x38] sm:$0xff] }
 0x2b5   :  { %v769_v36 = vsel %vm479_vm3, 1.0, %v836_v34  ;;  %v557_v40 = vperm.slane %v549_v33, %v992_v14  ;;  %v569_v9 = vperm.slane %v561_v37, %v992_v14  ;;  %v584_v47 = vrot.slane %v533_v35, 4  ;;  %v689_v29 = vld [vmem:[%s1201_s4 + $0x30] sm:$0xff]  ;;  %v688_v30 = vld [vmem:[%s1201_s4 + $0x28] sm:$0xff]  ;;  %v687_v33 = vld [vmem:[%s1201_s4 + $0x20] sm:$0xff] }
 0x2b6   :  { %v535_v38 = vsel %vm199_vm8, %v534_v32, %v769_v36  ;;  %v536_v39 = vrot.slane %v769_v36, 4  ;;  %v596_v50 = vrot.slane %v553_v41, 4  ;;  %v604_v2 = vrot.slane %v565_v51, 4  ;;  %704 = vmatpush.msra.mxu2 %v697_v19  ;;  %v686_v37 = vld [vmem:[%s1201_s4 + $0x18] sm:$0xff] }
 0x2b7   :  { %v541_v43 = vperm.slane %v535_v38, %v980_v56  ;;  %v600_v49 = vrot.slane %v557_v40, 4  ;;  %v608_v55 = vrot.slane %v569_v9, 4  ;;  %v685_v38 = vld [vmem:[%s1201_s4 + $0x10] sm:$0xff] }
 0x2b8   :  { %v537_v44 = vsel %vm199_vm8, %v771_v22, %v536_v39  ;;  %705 = vmatpush.msra.mxu2 %v696_v20  ;;  %v694_v22 = vld [vmem:[%s1201_s4 + $0x58] sm:$0xff] }
 0x2b9   :  { %v570_v45 = vrot.slane %v541_v43, 4  ;;  %v573_v46 = vsel %vm199_vm8, %v541_v43, %v572_v42  ;;  %v545_v34 = vperm.slane %v537_v44, %v980_v56  ;;  %v684_v42 = vld [vmem:[%s1201_s4 + $0x8] sm:$0xff] }
 0x2ba   :  { %v581_v48 = vperm.slane %v573_v46, %v992_v14  ;;  %706 = vmatpush.msra.mxu2 %v695_v21 }
 0x2bb   :  { %v571_v53 = vsel %vm199_vm8, %v570_v45, %v529_v28  ;;  %v585_v54 = vsel %vm199_vm8, %v545_v34, %v584_v47  ;;  %v582_v57 = vrot.slane %v545_v34, 4  ;;  %v683_v34 = vld [vmem:[%s1201_s4] sm:$0xff]  ;;  %s844_s4 = smov [#allocation2]  }
 0x2bc   :  { %v601_v58 = vsel %vm199_vm8, %v581_v48, %v600_v49  ;;  %v598_v52 = vrot.slane %v581_v48, 4  ;;  %v577_v59 = vperm.slane %v571_v53, %v992_v14  ;;  %v593_v56 = vperm.slane %v585_v54, %v992_v14  ;;  %707 = vmatpush.msra.mxu2 %v694_v22  ;;  %v793_v48 = vld [vmem:[%s1202_s5] ss:$0 sm:$0xff]  ;;  %s753_s5 = sshll.u32 %s844_s4, 4  ;;  %s754_s5 = int_to_ptr.vmem [resolvable:$true] %s753_s5 }
 0x2bd   :  { %619 = vrot.lane.b32.xlu2 %v601_v58, %s837_s2  ;;  %v583_v60 = vsel %vm199_vm8, %v582_v57, %v533_v35 }
 0x2be   :  { %v599_v61 = vsel %vm199_vm8, %v598_v52, %v557_v40  ;;  %v594_v62 = vrot.slane %v577_v59, 4  ;;  %v597_v63 = vsel %vm199_vm8, %v577_v59, %v596_v50  ;;  %v609_v0 = vsel %vm199_vm8, %v593_v56, %v608_v55  ;;  %708 = vmatpush.msra.mxu2 %v693_v23 }
 0x2bf   :  { %615 = vrot.lane.b32.xlu1 %v599_v61, %s838_s20  ;;  %611 = vrot.lane.b32.xlu0 %v597_v63, %s839_s0  ;;  %v589_v1 = vperm.slane %v583_v60, %v992_v14  ;;  %v606_v3 = vrot.slane %v593_v56, 4  ;;  %v658_v14 = vld [vmem:[%s1200_s3 + $0x38] sm:$0xff]  ;;  %s755_s3 = sshll.u32 %s1203_s6, 4  ;;  %s756_s3 = int_to_ptr.hbm [resolvable:$true] %s755_s3 }
 0x2c0   :  { %v595_v4 = vsel %vm199_vm8, %v594_v62, %v553_v41  ;;  %671 = vmatpush.msra.mxu1 %v658_v14  ;;  %709 = vmatpush.msra.mxu2 %v692_v24 }
 0x2c1   :  { %v605_v5 = vsel %vm199_vm8, %v589_v1, %v604_v2  ;;  %v602_v6 = vrot.slane %v589_v1, 4  ;;  %v607_v7 = vsel %vm199_vm8, %v606_v3, %v569_v9 }
 0x2c2   :  { %672 = vmatpush.msra.mxu1 %v657_v10  ;;  %710 = vmatpush.msra.mxu2 %v691_v25 }
 0x2c3   :  { %v603_v8 = vsel %vm199_vm8, %v602_v6, %v565_v51  ;;  %vm639_vm8 = vcmask 130048  }
 0x2c4   :  { %673 = vmatpush.msra.mxu1 %v656_v11  ;;  %711 = vmatpush.msra.mxu2 %v690_v27 }
 0x2c5   :  { %635 = vrot.lane.b32.xlu2 %v609_v0, %s840_s21 }
 0x2c6   :  { %674 = vmatpush.msra.mxu1 %v655_v12  ;;  %712 = vmatpush.msra.mxu2 %v689_v29 }
 0x2c7   :  { %627 = vrot.lane.b32.xlu1 %v605_v5, %s841_s22  ;;  %623 = vrot.lane.b32.xlu0 %v603_v8, %s842_s23 }
 0x2c8   :  { %675 = vmatpush.msra.mxu1 %v654_v13  ;;  %713 = vmatpush.msra.mxu2 %v688_v30 }
 0x2ca   :  { %676 = vmatpush.msra.mxu1 %v653_v15  ;;  %714 = vmatpush.msra.mxu2 %v687_v33 }
 0x2cc   :  { %677 = vmatpush.msra.mxu1 %v652_v16  ;;  %715 = vmatpush.msra.mxu2 %v686_v37 }
 0x2ce   :  { %678 = vmatpush.msra.mxu1 %v651_v17  ;;  %716 = vmatpush.msra.mxu2 %v685_v38 }
 0x2cf   :  { %631 = vrot.lane.b32.xlu0 %v607_v7, %s843_s24 }
 0x2d0   :  { %717 = vmatpush.msra.mxu2 %v684_v42 }
 0x2d2   :  { %718 = vmatpush.msra.mxu2 %v683_v34 }
 0x317   :  { %v620_v32 = vpop.permute.xlu2 %619 }
 0x31f   :  { %v636_v44 = vpop.permute.xlu2 %635 }
 0x331   :  { %v612_v26 = vpop.permute.xlu0 %611  ;;  %v616_v28 = vpop.permute.xlu1 %615 }
 0x332   :  { %v638_v31 = vsel %vm311_vm9, %v595_v4, %v612_v26  ;;  %vm645_vm9 = vcmask 326656  }
 0x333   :  { %v640_v36 = vsel %vm639_vm8, %v638_v31, %v616_v28 }
 0x334   :  { %v642_v39 = vsel %vm641_vm4, %v640_v36, %v620_v32 }
 0x339   :  { %v624_v35 = vpop.permute.xlu0 %623  ;;  %v628_v40 = vpop.permute.xlu1 %627 }
 0x33a   :  { %v644_v41 = vsel %vm643_vm5, %v642_v39, %v624_v35 }
 0x33b   :  { %v646_v9 = vsel %vm645_vm9, %v644_v41, %v628_v40 }
 0x341   :  { %v632_v43 = vpop.permute.xlu0 %631 }
 0x342   :  { %v648_v45 = vsel %vm647_vm6, %v646_v9, %v632_v43 }
 0x343   :  { %v650_v46 = vsel %vm649_vm7, %v648_v45, %v636_v44 }
 0x344   :  { %772 = vmatmul.msk.f32.vlgmr.msra.gmra.mxu1 %vm659_vm10, %v650_v46 }
 0x3c1   :  { %v680_v47 = vpop.f32.mrf.mxu1 }
 0x3c2   :  { %719 = vmatmul.f32.vlgmr.msra.gmra.mxu2 %v680_v47 }
 0x445   :  { %v720_v49 = vpop.f32.mrf.mxu2 }
 0x446   :  { %v721_v50 = vadd.f32 %v793_v48, %v720_v49 }
 0x448   :  { %v723_v51 = vsel %vm639_vm8, %v721_v50, -inf }
 0x449   :  { %724 = vmax.xlane.f32.xlu1 %v723_v51 }
 0x4bc   :  { %v725_v53 = vpop.xlane.xlu1 %724 }
 0x4bd   :  { %v726_v54 = vsub.f32 %v721_v50, %v725_v53 }
 0x4bf   :  { %v727_v55 = vmul.f32 1.442695, %v726_v54 }
 0x4c1   :  { %796 = vpow2.f32 %v727_v55 }
 0x4c7   :  { %v797_v57 = vpop.eup %796 }
 0x4c8   :  { %v729_v58 = vsel %vm639_vm8, %v797_v57, 0.0 }
 0x4c9   :  { %730 = vadd.xlane.f32.xlu0 %v729_v58 }
 0x53c   :  { %v731_v52 = vpop.xlane.xlu0 %730 }
 0x53d   :  { %798 = vrcp.f32 %v731_v52  ;;  %v743_v61 = vand.u32 2147483648, %v731_v52  ;;  %v741_v63 = vand.u32 2147483647, %v731_v52  ;;  %vm737_vm12 = vweird.f32 %v731_v52 }
 0x53f   :  { %v744_v1 = vor.u32 1.1754944e-38, %v743_v61  ;;  %vm742_vm14 = vcmp.eq.f32.partialorder %v741_v63, 8.507059e+37 }
 0x543   :  { %v799_v59 = vpop.eup %798 }
 0x544   :  { %v733_v56 = vmul.f32 %v799_v59, %v731_v52  ;;  %vm738_vm11 = vweird.f32 %v799_v59 }
 0x545   :  { %vm739_vm13 = vmor %vm737_vm12, %vm738_vm11 }
 0x546   :  { %v734_v60 = vsub.f32 1.0, %v733_v56 }
 0x548   :  { %v735_v62 = vmul.f32 %v799_v59, %v734_v60 }
 0x54a   :  { %v736_v0 = vadd.f32 %v799_v59, %v735_v62 }
 0x54c   :  { %v740_v2 = vsel %vm739_vm13, %v799_v59, %v736_v0 }
 0x54d   :  { %v745_v3 = vsel %vm742_vm14, %v744_v1, %v740_v2 }
 0x54e   :  { %v746_v4 = vmul.f32 %v797_v57, %v745_v3 }
 0x550   :  { %747 = vst.msk [vmem:[#allocation2] sm:$0xff] %vm639_vm8, %v746_v4 }
 0x551   :  { %758 = dma.vmem_to_hbm [thread:$0]  %s754_s5, 128, %s756_s3, [#allocation3]  }
 0x552   :  { %824 = dma.done.wait [#allocation3], 128  }
 0x553   :  { %825 = vsyncadd [#allocation3], 4294967168 }
 0x554   :  { %763 = vsyncpa [#allocation3], 1 }

</bundles_post_ra>
